<compile_context>
chip_gen: v5e
topology: v5e:2x2
jax: 0.10.0
libtpu: 0.0.40
codegen_flags: <defaults>
</compile_context>

<pallas_src>
import functools

import jax
import jax.numpy as jnp
from jax.experimental import pallas as pl
from jax.experimental.pallas import tpu as pltpu


def _round_up(x: int, m: int) -> int:
    return (x + m - 1) // m * m


def _mlp_kernel(x_ref, w1_ref, b1_ref, w2_ref, b2_ref, w3_ref, b3_ref, o_ref):
    """Fused Linear->ReLU->Linear->ReLU->Linear->Sigmoid over one row tile.

    x_ref : (tm, dim)  bf16   row tile of snippet features
    w1    : (dim, d4)  bf16
    b1    : (1, d4)    f32
    w2    : (d4, d16)  bf16
    b2    : (1, d16)   f32
    w3    : (1, d16)   bf16   (final weight pre-transposed to a lane row)
    b3    : (1, 1)     f32    (SMEM scalar)
    o_ref : (1, tm)    f32    lane-dense sigmoid scores for this tile
    """
    x = x_ref[...]

    # Layer 1 (MXU, bf16 operands, f32 accumulation) + ReLU.  Dropout = identity.
    h1 = jnp.dot(x, w1_ref[...], preferred_element_type=jnp.float32) + b1_ref[...]
    h1 = jnp.maximum(h1, 0.0)

    # Layer 2 (MXU) + ReLU.
    h2 = jnp.dot(h1.astype(jnp.bfloat16), w2_ref[...],
                 preferred_element_type=jnp.float32) + b2_ref[...]
    h2 = jnp.maximum(h2, 0.0)

    # Layer 3 computed transposed: (1, d16) contracted against (tm, d16) along
    # d16 -> (1, tm).  The per-row score lands lane-dense, so the store is a
    # dense vst + contiguous HBM writeback instead of a masked (tm, 1) column.
    logits = jax.lax.dot_general(
        w3_ref[...], h2.astype(jnp.bfloat16),
        dimension_numbers=(((1,), (1,)), ((), ())),
        preferred_element_type=jnp.float32,
    ) + b3_ref[0, 0]

    o_ref[...] = jax.nn.sigmoid(logits).astype(o_ref.dtype)


def classifier_mlp(x, w1, b1, w2, b2, w3, b3, *, block_m=512):
    """x: (M, dim) f32 -> (M,) f32 sigmoid scores, fused 3-layer MLP kernel."""
    M, dim = x.shape
    d4 = w1.shape[1]
    d16 = w2.shape[1]

    # Row tile: multiple of 128 (keeps the output store lane-dense) and as big
    # as comfortably fits VMEM.  The kernel is HBM-bound on the x stream, so a
    # large tile amortizes the ~0.35us per-grid-step overhead; sweep 512..2048
    # per chip.  On v7x keep the grid length >= 2x the TensorCore count so the
    # "parallel" axis still shards across both cores.
    tm = min(block_m, _round_up(M, 128))
    m_pad = _round_up(M, tm)

    # bf16 for the dominant HBM stream (x) and the matmul operands; biases and
    # accumulation stay f32 (post-matmul elementwise is done in f32 too).
    x = x.astype(jnp.bfloat16)
    if m_pad != M:
        x = jnp.pad(x, ((0, m_pad - M), (0, 0)))       # garbage rows sliced off later
    w1 = w1.astype(jnp.bfloat16)
    w2 = w2.astype(jnp.bfloat16)
    w3_row = w3.reshape(1, d16).astype(jnp.bfloat16)    # (d16, 1) -> (1, d16)
    b3 = b3.reshape(1, 1).astype(jnp.float32)

    grid = (m_pad // tm,)

    out = pl.pallas_call(
        _mlp_kernel,
        out_shape=jax.ShapeDtypeStruct((1, m_pad), jnp.float32),
        grid_spec=pltpu.PrefetchScalarGridSpec(
            num_scalar_prefetch=0,
            grid=grid,
            in_specs=[
                # x row tile: the only block whose index changes with the grid.
                # (If profiling on v5e still shows exposed DMA, add
                #  pipeline_mode=pl.Buffered(3) here.)
                pl.BlockSpec((tm, dim), lambda i: (i, 0)),
                # Weights/biases: constant index_map -> fetched once, resident.
                pl.BlockSpec((dim, d4), lambda i: (0, 0)),
                pl.BlockSpec((1, d4), lambda i: (0, 0)),
                pl.BlockSpec((d4, d16), lambda i: (0, 0)),
                pl.BlockSpec((1, d16), lambda i: (0, 0)),
                pl.BlockSpec((1, d16), lambda i: (0, 0)),
                # Final bias as an SMEM scalar (a (1,1) VMEM block would burn a
                # padded (8,128) tile + a vld per step).
                pl.BlockSpec(memory_space=pltpu.MemorySpace.SMEM),
            ],
            out_specs=pl.BlockSpec((1, tm), lambda i: (0, i)),
        ),
        compiler_params=pltpu.CompilerParams(
            dimension_semantics=("parallel",),
        ),
    )(x, w1, b1, w2, b2, w3_row, b3)

    return out.reshape(-1)[:M]


def init_params(key, dim):
    """Deterministic synthetic init for the 3 Linear layers (stored as (in, out))."""
    d4, d16 = dim // 4, dim // 16
    k1, k2, k3, k4, k5, k6 = jax.random.split(key, 6)

    def lin_init(kw, kb, fan_in, fan_out):
        bound = 1.0 / jnp.sqrt(fan_in)
        w = jax.random.uniform(kw, (fan_in, fan_out), jnp.float32, -bound, bound)
        b = jax.random.uniform(kb, (1, fan_out), jnp.float32, -bound, bound)
        return w, b

    w1, b1 = lin_init(k1, k2, dim, d4)
    w2, b2 = lin_init(k3, k4, d4, d16)
    w3, b3 = lin_init(k5, k6, d16, 1)
    return dict(w1=w1, b1=b1, w2=w2, b2=b2, w3=w3, b3=b3)


@functools.partial(jax.jit, static_argnames=("k",))
def baseline_model_forward(video, params, k=3):
    """video: (B, N, T, C) -> {'snippet_score': (B, T), 'topk_score': (B,)}."""
    B, N, T, C = video.shape
    flat = video.reshape(B * N * T, C)                   # rows for the MLP kernel
    scores = classifier_mlp(
        flat,
        params["w1"], params["b1"],
        params["w2"], params["b2"],
        params["w3"], params["b3"],
    )                                                    # (B*N*T,)
    video_score = scores.reshape(B, N, T).mean(axis=1)   # mean over N crops -> (B, T)
    topk_vals = jax.lax.top_k(video_score, k)[0]         # (B, k)
    video_max_topk_score = topk_vals.mean(axis=-1)       # (B,)
    return {"snippet_score": video_score, "topk_score": video_max_topk_score}


if __name__ == "__main__":
    key = jax.random.PRNGKey(0)
    k_params, k_data = jax.random.split(key)

    # Small shapes consistent with the module: dim divisible by 16, T >= k.
    B, N, T, dim = 2, 2, 8, 128
    params = init_params(k_params, dim)
    video = jax.random.normal(k_data, (B, N, T, dim), dtype=jnp.float32)

    out = baseline_model_forward(video, params, k=3)
    jax.block_until_ready(out)

    assert out["snippet_score"].shape == (B, T)
    assert out["topk_score"].shape == (B,)
    # Sigmoid outputs must lie in (0, 1).
    assert bool(jnp.all(out["snippet_score"] > 0.0) & jnp.all(out["snippet_score"] < 1.0))
    print("KERNEL_OK")
</pallas_src>

<mosaic_0001>
module attributes {stable_mosaic.version = 11 : i64} {
  func.func @_mlp_kernel(%arg0: i32, %arg1: memref<128x128xbf16, #tpu.memory_space<vmem>>, %arg2: memref<128x32xbf16, #tpu.memory_space<vmem>>, %arg3: memref<1x32xf32, #tpu.memory_space<vmem>>, %arg4: memref<32x8xbf16, #tpu.memory_space<vmem>>, %arg5: memref<1x8xf32, #tpu.memory_space<vmem>>, %arg6: memref<1x8xbf16, #tpu.memory_space<vmem>>, %arg7: memref<1x1xf32, #tpu.memory_space<smem>>, %arg8: memref<1x128xf32, #tpu.memory_space<vmem>>) attributes {dimension_semantics = [#tpu.dimension_semantics<parallel>], iteration_bounds = array<i64: 1>, scalar_prefetch = 0 : i64, scratch_operands = 0 : i64, tpu.core_type = #tpu.core_type<tc>, window_params = [{transform_indices = @transform_0, window_bounds = array<i64: 128, 128>}, {pipeline_mode = #tpu.pipeline_mode<synchronous>, transform_indices = @transform_1, window_bounds = array<i64: 128, 32>}, {pipeline_mode = #tpu.pipeline_mode<synchronous>, transform_indices = @transform_2, window_bounds = array<i64: 1, 32>}, {pipeline_mode = #tpu.pipeline_mode<synchronous>, transform_indices = @transform_3, window_bounds = array<i64: 32, 8>}, {pipeline_mode = #tpu.pipeline_mode<synchronous>, transform_indices = @transform_4, window_bounds = array<i64: 1, 8>}, {pipeline_mode = #tpu.pipeline_mode<synchronous>, transform_indices = @transform_5, window_bounds = array<i64: 1, 8>}, {transform_indices = @transform_6, window_bounds = array<i64: 1, 1>}, {transform_indices = @transform_7, window_bounds = array<i64: 1, 128>}]} {
    %c0 = arith.constant 0 : index
    %c0_0 = arith.constant 0 : index
    %0 = vector.load %arg1[%c0, %c0_0] : memref<128x128xbf16, #tpu.memory_space<vmem>>, vector<128x128xbf16>
    %c0_1 = arith.constant 0 : index
    %c0_2 = arith.constant 0 : index
    %1 = vector.load %arg2[%c0_1, %c0_2] : memref<128x32xbf16, #tpu.memory_space<vmem>>, vector<128x32xbf16>
    %cst = arith.constant dense<0.000000e+00> : vector<128x32xf32>
    %2 = tpu.matmul %0, %1, %cst {dimension_numbers = #tpu.dot_dimension_numbers<[1], [0], [0], [1], [0, 0, 1, 1], [], []>} : vector<128x128xbf16>, vector<128x32xbf16>, vector<128x32xf32> -> vector<128x32xf32>
    %c0_3 = arith.constant 0 : index
    %c0_4 = arith.constant 0 : index
    %3 = vector.load %arg3[%c0_3, %c0_4] : memref<1x32xf32, #tpu.memory_space<vmem>>, vector<1x32xf32>
    %4 = vector.broadcast %3 : vector<1x32xf32> to vector<128x32xf32>
    %5 = arith.addf %2, %4 : vector<128x32xf32>
    %cst_5 = arith.constant 0.000000e+00 : f32
    %6 = vector.broadcast %cst_5 : f32 to vector<128x32xf32>
    %7 = arith.maximumf %5, %6 : vector<128x32xf32>
    %8 = arith.truncf %7 : vector<128x32xf32> to vector<128x32xbf16>
    %c0_6 = arith.constant 0 : index
    %c0_7 = arith.constant 0 : index
    %9 = vector.load %arg4[%c0_6, %c0_7] : memref<32x8xbf16, #tpu.memory_space<vmem>>, vector<32x8xbf16>
    %cst_8 = arith.constant dense<0.000000e+00> : vector<128x8xf32>
    %10 = tpu.matmul %8, %9, %cst_8 {dimension_numbers = #tpu.dot_dimension_numbers<[1], [0], [0], [1], [0, 0, 1, 1], [], []>} : vector<128x32xbf16>, vector<32x8xbf16>, vector<128x8xf32> -> vector<128x8xf32>
    %c0_9 = arith.constant 0 : index
    %c0_10 = arith.constant 0 : index
    %11 = vector.load %arg5[%c0_9, %c0_10] : memref<1x8xf32, #tpu.memory_space<vmem>>, vector<1x8xf32>
    %12 = vector.broadcast %11 : vector<1x8xf32> to vector<128x8xf32>
    %13 = arith.addf %10, %12 : vector<128x8xf32>
    %cst_11 = arith.constant 0.000000e+00 : f32
    %14 = vector.broadcast %cst_11 : f32 to vector<128x8xf32>
    %15 = arith.maximumf %13, %14 : vector<128x8xf32>
    %c0_12 = arith.constant 0 : index
    %c0_13 = arith.constant 0 : index
    %16 = vector.load %arg6[%c0_12, %c0_13] : memref<1x8xbf16, #tpu.memory_space<vmem>>, vector<1x8xbf16>
    %17 = arith.truncf %15 : vector<128x8xf32> to vector<128x8xbf16>
    %cst_14 = arith.constant dense<0.000000e+00> : vector<1x128xf32>
    %18 = tpu.matmul %16, %17, %cst_14 {dimension_numbers = #tpu.dot_dimension_numbers<[1], [1], [0], [0], [0, 0, 1, 0], [], []>} : vector<1x8xbf16>, vector<128x8xbf16>, vector<1x128xf32> -> vector<1x128xf32>
    %c0_15 = arith.constant 0 : index
    %c0_16 = arith.constant 0 : index
    %19 = memref.load %arg7[%c0_15, %c0_16] : memref<1x1xf32, #tpu.memory_space<smem>>
    %20 = vector.broadcast %19 : f32 to vector<1x128xf32>
    %21 = arith.addf %18, %20 : vector<1x128xf32>
    %22 = arith.negf %21 : vector<1x128xf32>
    %23 = math.exp %22 : vector<1x128xf32>
    %cst_17 = arith.constant 1.000000e+00 : f32
    %24 = vector.broadcast %cst_17 : f32 to vector<1x128xf32>
    %25 = arith.addf %24, %23 : vector<1x128xf32>
    %26 = arith.divf %24, %25 : vector<1x128xf32>
    %c0_18 = arith.constant 0 : index
    %c0_19 = arith.constant 0 : index
    %27 = vector.load %arg8[%c0_18, %c0_19] : memref<1x128xf32, #tpu.memory_space<vmem>>, vector<1x128xf32>
    tpu.vector_store %arg8[%c0_18, %c0_19], %26 {strides = array<i32>} : memref<1x128xf32, #tpu.memory_space<vmem>>, vector<1x128xf32>,
    return
  }
  func.func @transform_0(%arg0: i32) -> (i32, i32) {
    %c0_i32 = arith.constant 0 : i32
    %c0_i32_0 = arith.constant 0 : i32
    return %arg0, %c0_i32 : i32, i32
  }
  func.func @transform_1(%arg0: i32) -> (i32, i32) {
    %c0_i32 = arith.constant 0 : i32
    %c0_i32_0 = arith.constant 0 : i32
    %c0_i32_1 = arith.constant 0 : i32
    return %c0_i32, %c0_i32_0 : i32, i32
  }
  func.func @transform_2(%arg0: i32) -> (i32, i32) {
    %c0_i32 = arith.constant 0 : i32
    %c0_i32_0 = arith.constant 0 : i32
    %c0_i32_1 = arith.constant 0 : i32
    return %c0_i32, %c0_i32_0 : i32, i32
  }
  func.func @transform_3(%arg0: i32) -> (i32, i32) {
    %c0_i32 = arith.constant 0 : i32
    %c0_i32_0 = arith.constant 0 : i32
    %c0_i32_1 = arith.constant 0 : i32
    return %c0_i32, %c0_i32_0 : i32, i32
  }
  func.func @transform_4(%arg0: i32) -> (i32, i32) {
    %c0_i32 = arith.constant 0 : i32
    %c0_i32_0 = arith.constant 0 : i32
    %c0_i32_1 = arith.constant 0 : i32
    return %c0_i32, %c0_i32_0 : i32, i32
  }
  func.func @transform_5(%arg0: i32) -> (i32, i32) {
    %c0_i32 = arith.constant 0 : i32
    %c0_i32_0 = arith.constant 0 : i32
    %c0_i32_1 = arith.constant 0 : i32
    return %c0_i32, %c0_i32_0 : i32, i32
  }
  func.func @transform_6(%arg0: i32) -> (i32, i32) {
    %c0_i32 = arith.constant 0 : i32
    %c0_i32_0 = arith.constant 0 : i32
    %c0_i32_1 = arith.constant 0 : i32
    return %c0_i32, %c0_i32_0 : i32, i32
  }
  func.func @transform_7(%arg0: i32) -> (i32, i32) {
    %c0_i32 = arith.constant 0 : i32
    %c0_i32_0 = arith.constant 0 : i32
    return %c0_i32, %arg0 : i32, i32
  }
}

</mosaic_0001>

<bundles_post_ra>
// kernel: baseline_model_forward.1
= control target key start
LH: loop header
LB: loop body
LE: loop exit
PB: predicated region body
PF: predicated region fallthrough
CT: control target
= control target key end

     0   :  { %vm253_vm0 = vcmask 261120   ;;  %vm354_vm1 = vcmask 64512   ;;  %s662_s1 = inlined_call_operand.vmem [shape: bf16[128,32], index: 1, kind: input, shape index: {}]   ;;  %s663_s2 = inlined_call_operand.vmem [shape: f32[1,32], index: 2, kind: input, shape index: {}]   ;;  %s664_s0 = inlined_call_operand.vmem [shape: bf16[128,128], index: 0, kind: input, shape index: {}]   ;;  %s665_s3 = inlined_call_operand.vmem [shape: bf16[32,8], index: 3, kind: input, shape index: {}]   ;;  %s666_s4 = inlined_call_operand.vmem [shape: f32[1,8], index: 4, kind: input, shape index: {}]   ;;  %s667_s5 = inlined_call_operand.vmem [shape: bf16[1,8], index: 5, kind: input, shape index: {}]   ;;  %s668_s6 = inlined_call_operand.<no memory space> [shape: f32[1,1], index: 6, kind: input, shape index: {}]   ;;  %s669_s7 = inlined_call_operand.vmem [shape: f32[1,128], index: 7, kind: output, shape index: {}]  }
   0x1   :  { %v516_v0 = vld [vmem:[%s662_s1 + $0x38] sm:$0xff]  ;;  %v515_v1 = vld [vmem:[%s662_s1 + $0x30] sm:$0xff]  ;;  %v514_v2 = vld [vmem:[%s662_s1 + $0x28] sm:$0xff] }
   0x2   :  { %160 = vmatpush.bf16.msra.mxu0 %v516_v0  ;;  %519 = vmatpush.bf16.msra.mxu3 %v516_v0  ;;  %v513_v3 = vld [vmem:[%s662_s1 + $0x20] sm:$0xff]  ;;  %v512_v4 = vld [vmem:[%s662_s1 + $0x18] sm:$0xff]  ;;  %v511_v5 = vld [vmem:[%s662_s1 + $0x10] sm:$0xff] }
   0x3   :  { %v510_v6 = vld [vmem:[%s662_s1 + $0x8] sm:$0xff]  ;;  %v509_v7 = vld [vmem:[%s662_s1] sm:$0xff]  ;;  %v503_v10 = vld [vmem:[%s664_s0 + $0x10] sm:$0xff] }
   0x4   :  { %v501_v8 = vld [vmem:[%s664_s0] sm:$0xff]  ;;  %v502_v9 = vld [vmem:[%s664_s0 + $0x8] sm:$0xff]  ;;  %v504_v12 = vld [vmem:[%s664_s0 + $0x18] sm:$0xff] }
   0x5   :  { %v506_v11 = vld [vmem:[%s664_s0 + $0x28] sm:$0xff]  ;;  %v507_v13 = vld [vmem:[%s664_s0 + $0x30] sm:$0xff]  ;;  %v505_v14 = vld [vmem:[%s664_s0 + $0x20] sm:$0xff] }
   0x6   :  { %161 = vmatpush.bf16.msra.mxu0 %v515_v1  ;;  %520 = vmatpush.bf16.msra.mxu3 %v515_v1  ;;  %v508_v15 = vld [vmem:[%s664_s0 + $0x38] sm:$0xff]  ;;  %v518_v16 = vld [vmem:[%s665_s3 + $0x8] sm:$0xff]  ;;  %v517_v17 = vld [vmem:[%s665_s3] sm:$0xff] }
   0x7   :  { %284 = vmatpush.bf16.msra.mxu1 %v518_v16  ;;  %v527_v19 = vld [vmem:[%s663_s2] ss:$0 sm:$0xff] }
   0xa   :  { %162 = vmatpush.bf16.msra.mxu0 %v514_v2  ;;  %521 = vmatpush.bf16.msra.mxu3 %v514_v2 }
   0xb   :  { %285 = vmatpush.bf16.msra.mxu1 %v517_v17 }
   0xe   :  { %163 = vmatpush.bf16.msra.mxu0 %v513_v3  ;;  %522 = vmatpush.bf16.msra.mxu3 %v513_v3 }
  0x12   :  { %164 = vmatpush.bf16.msra.mxu0 %v512_v4  ;;  %523 = vmatpush.bf16.msra.mxu3 %v512_v4 }
  0x16   :  { %165 = vmatpush.bf16.msra.mxu0 %v511_v5  ;;  %524 = vmatpush.bf16.msra.mxu3 %v511_v5 }
  0x1a   :  { %166 = vmatpush.bf16.msra.mxu0 %v510_v6  ;;  %525 = vmatpush.bf16.msra.mxu3 %v510_v6 }
  0x1e   :  { %167 = vmatpush.bf16.msra.mxu0 %v509_v7  ;;  %526 = vmatpush.bf16.msra.mxu3 %v509_v7 }
  0x21   :  { %168 = vmatmul.bf16.vlgmr.msra.gmra.mxu0 %v501_v8  ;;  %193 = vmatmul.bf16.vlgmr.msra.gmra.mxu3 %v506_v11 }
  0x31   :  { %173 = vmatmul.bf16.gmra.mxu0 %v502_v9  ;;  %198 = vmatmul.bf16.gmra.mxu3 %v507_v13 }
  0x41   :  { %178 = vmatmul.bf16.gmra.mxu0 %v503_v10  ;;  %203 = vmatmul.bf16.gmra.mxu3 %v508_v15 }
  0x51   :  { %183 = vmatmul.bf16.gmra.mxu0 %v504_v12  ;;  %v528_v12 = vld [vmem:[%s666_s4] ss:$0 sm:$0xff] }
  0x61   :  { %188 = vmatmul.bf16.gmra.mxu0 %v505_v14 }
  0x9e   :  { %v169_v18 = vpop.f32.mrf.mxu0 }
  0x9f   :  { %v170_v20 = vadd.f32 %v527_v19, %v169_v18 }
  0xa1   :  { %v209_v23 = vmax.f32 %v170_v20, 0.0 }
  0xa4   :  { %v194_v48 = vpop.f32.mrf.mxu3 }
  0xa5   :  { %v195_v57 = vadd.f32 %v527_v19, %v194_v48 }
  0xa6   :  { %v171_v21 = vpop.f32.mrf.mxu0 }
  0xa7   :  { %v172_v22 = vadd.f32 %v527_v19, %v171_v21  ;;  %v219_v59 = vmax.f32 %v195_v57, 0.0 }
  0xa9   :  { %v210_v24 = vmax.f32 %v172_v22, 0.0 }
  0xab   :  { %v225_v25 = vpack.c.bf16 %v210_v24, %v209_v23 }
  0xac   :  { %v196_v52 = vpop.f32.mrf.mxu3 }
  0xad   :  { %491 = vmatmul.msk.bf16.vlgmr.msra.gmra.mxu1 %vm253_vm0, %v225_v25  ;;  %v197_v58 = vadd.f32 %v527_v19, %v196_v52 }
  0xae   :  { %v174_v26 = vpop.f32.mrf.mxu0 }
  0xaf   :  { %v175_v27 = vadd.f32 %v527_v19, %v174_v26  ;;  %v220_v60 = vmax.f32 %v197_v58, 0.0 }
  0xb1   :  { %v211_v30 = vmax.f32 %v175_v27, 0.0  ;;  %v230_v61 = vpack.c.bf16 %v220_v60, %v219_v59 }
  0xb4   :  { %v199_v56 = vpop.f32.mrf.mxu3 }
  0xb5   :  { %v200_v63 = vadd.f32 %v527_v19, %v199_v56 }
  0xb6   :  { %v176_v28 = vpop.f32.mrf.mxu0 }
  0xb7   :  { %v177_v29 = vadd.f32 %v527_v19, %v176_v28  ;;  %v221_v2 = vmax.f32 %v200_v63, 0.0 }
  0xb9   :  { %v212_v31 = vmax.f32 %v177_v29, 0.0 }
  0xbb   :  { %v226_v32 = vpack.c.bf16 %v212_v31, %v211_v30 }
  0xbc   :  { %v201_v62 = vpop.f32.mrf.mxu3 }
  0xbd   :  { %492 = vmatmul.msk.bf16.gmra.mxu1 %vm253_vm0, %v226_v32  ;;  %v202_v0 = vadd.f32 %v527_v19, %v201_v62 }
  0xbe   :  { %v179_v33 = vpop.f32.mrf.mxu0 }
  0xbf   :  { %v180_v34 = vadd.f32 %v527_v19, %v179_v33  ;;  %v222_v3 = vmax.f32 %v202_v0, 0.0 }
  0xc1   :  { %v213_v37 = vmax.f32 %v180_v34, 0.0  ;;  %v231_v4 = vpack.c.bf16 %v222_v3, %v221_v2 }
  0xc4   :  { %v204_v1 = vpop.f32.mrf.mxu3 }
  0xc5   :  { %v205_v6 = vadd.f32 %v527_v19, %v204_v1 }
  0xc6   :  { %v181_v35 = vpop.f32.mrf.mxu0 }
  0xc7   :  { %v182_v36 = vadd.f32 %v527_v19, %v181_v35  ;;  %v223_v8 = vmax.f32 %v205_v6, 0.0 }
  0xc9   :  { %v214_v38 = vmax.f32 %v182_v36, 0.0 }
  0xcb   :  { %v227_v39 = vpack.c.bf16 %v214_v38, %v213_v37 }
  0xcc   :  { %v206_v5 = vpop.f32.mrf.mxu3 }
  0xcd   :  { %493 = vmatmul.msk.bf16.gmra.mxu1 %vm253_vm0, %v227_v39  ;;  %v207_v7 = vadd.f32 %v527_v19, %v206_v5 }
  0xce   :  { %v184_v40 = vpop.f32.mrf.mxu0 }
  0xcf   :  { %v185_v41 = vadd.f32 %v527_v19, %v184_v40  ;;  %v224_v9 = vmax.f32 %v207_v7, 0.0 }
  0xd1   :  { %v215_v44 = vmax.f32 %v185_v41, 0.0  ;;  %v232_v10 = vpack.c.bf16 %v224_v9, %v223_v8 }
  0xd6   :  { %v186_v42 = vpop.f32.mrf.mxu0 }
  0xd7   :  { %v187_v43 = vadd.f32 %v527_v19, %v186_v42 }
  0xd9   :  { %v216_v45 = vmax.f32 %v187_v43, 0.0 }
  0xdb   :  { %v228_v46 = vpack.c.bf16 %v216_v45, %v215_v44 }
  0xdd   :  { %494 = vmatmul.msk.bf16.gmra.mxu1 %vm253_vm0, %v228_v46 }
  0xde   :  { %v189_v47 = vpop.f32.mrf.mxu0 }
  0xdf   :  { %v190_v49 = vadd.f32 %v527_v19, %v189_v47 }
  0xe1   :  { %v217_v53 = vmax.f32 %v190_v49, 0.0 }
  0xe6   :  { %v191_v50 = vpop.f32.mrf.mxu0 }
  0xe7   :  { %v192_v51 = vadd.f32 %v527_v19, %v191_v50 }
  0xe9   :  { %v218_v54 = vmax.f32 %v192_v51, 0.0 }
  0xeb   :  { %v229_v55 = vpack.c.bf16 %v218_v54, %v217_v53 }
  0xed   :  { %495 = vmatmul.msk.bf16.gmra.mxu1 %vm253_vm0, %v229_v55 }
  0xfd   :  { %496 = vmatmul.msk.bf16.gmra.mxu1 %vm253_vm0, %v230_v61 }
 0x10d   :  { %497 = vmatmul.msk.bf16.gmra.mxu1 %vm253_vm0, %v231_v4 }
 0x11d   :  { %498 = vmatmul.msk.bf16.gmra.mxu1 %vm253_vm0, %v232_v10 }
 0x12a   :  { %v287_v11 = vpop.f32.mrf.mxu1 }
 0x12b   :  { %v288_v13 = vadd.f32 %v528_v12, %v287_v11 }
 0x12d   :  { %v327_v16 = vmax.f32 %v288_v13, 0.0  ;;  %v353_v13 = vstv %s668_s6 }
 0x132   :  { %v289_v14 = vpop.f32.mrf.mxu1 }
 0x133   :  { %v290_v15 = vadd.f32 %v528_v12, %v289_v14 }
 0x135   :  { %v328_v17 = vmax.f32 %v290_v15, 0.0 }
 0x137   :  { %v641_v18 = vpack.c.bf16 %v328_v17, %v327_v16 }
 0x139   :  { %v359_v11 = vsel %vm354_vm1, %v641_v18, 0 }
 0x13a   :  { %v292_v20 = vpop.f32.mrf.mxu1 }
 0x13b   :  { %v293_v21 = vadd.f32 %v528_v12, %v292_v20 }
 0x13d   :  { %v329_v23 = vmax.f32 %v293_v21, 0.0 }
 0x142   :  { %v294_v19 = vpop.f32.mrf.mxu1 }
 0x143   :  { %v295_v22 = vadd.f32 %v528_v12, %v294_v19 }
 0x145   :  { %v330_v24 = vmax.f32 %v295_v22, 0.0 }
 0x147   :  { %v345_v25 = vpack.c.bf16 %v330_v24, %v329_v23 }
 0x149   :  { %v362_v10 = vsel %vm354_vm1, %v345_v25, 0 }
 0x14a   :  { %v297_v26 = vpop.f32.mrf.mxu1 }
 0x14b   :  { %v298_v27 = vadd.f32 %v528_v12, %v297_v26 }
 0x14d   :  { %v331_v30 = vmax.f32 %v298_v27, 0.0 }
 0x152   :  { %v299_v28 = vpop.f32.mrf.mxu1 }
 0x153   :  { %v300_v29 = vadd.f32 %v528_v12, %v299_v28 }
 0x155   :  { %v332_v31 = vmax.f32 %v300_v29, 0.0 }
 0x157   :  { %v346_v32 = vpack.c.bf16 %v332_v31, %v331_v30 }
 0x159   :  { %v365_v9 = vsel %vm354_vm1, %v346_v32, 0 }
 0x15a   :  { %v302_v33 = vpop.f32.mrf.mxu1 }
 0x15b   :  { %v303_v34 = vadd.f32 %v528_v12, %v302_v33 }
 0x15d   :  { %v333_v37 = vmax.f32 %v303_v34, 0.0 }
 0x162   :  { %v304_v35 = vpop.f32.mrf.mxu1 }
 0x163   :  { %v305_v36 = vadd.f32 %v528_v12, %v304_v35 }
 0x165   :  { %v334_v38 = vmax.f32 %v305_v36, 0.0 }
 0x167   :  { %v347_v39 = vpack.c.bf16 %v334_v38, %v333_v37 }
 0x169   :  { %v368_v8 = vsel %vm354_vm1, %v347_v39, 0 }
 0x16a   :  { %v307_v40 = vpop.f32.mrf.mxu1 }
 0x16b   :  { %v308_v41 = vadd.f32 %v528_v12, %v307_v40 }
 0x16d   :  { %v335_v44 = vmax.f32 %v308_v41, 0.0 }
 0x172   :  { %v309_v42 = vpop.f32.mrf.mxu1 }
 0x173   :  { %v310_v43 = vadd.f32 %v528_v12, %v309_v42 }
 0x175   :  { %v336_v45 = vmax.f32 %v310_v43, 0.0 }
 0x177   :  { %v348_v46 = vpack.c.bf16 %v336_v45, %v335_v44 }
 0x179   :  { %v371_v7 = vsel %vm354_vm1, %v348_v46, 0 }
 0x17a   :  { %v312_v47 = vpop.f32.mrf.mxu1 }
 0x17b   :  { %v313_v1 = vadd.f32 %v528_v12, %v312_v47 }
 0x17d   :  { %v337_v4 = vmax.f32 %v313_v1, 0.0 }
 0x182   :  { %v314_v48 = vpop.f32.mrf.mxu1 }
 0x183   :  { %v315_v63 = vadd.f32 %v528_v12, %v314_v48 }
 0x185   :  { %v338_v2 = vmax.f32 %v315_v63, 0.0 }
 0x187   :  { %v349_v5 = vpack.c.bf16 %v338_v2, %v337_v4 }
 0x189   :  { %v374_v6 = vsel %vm354_vm1, %v349_v5, 0 }
 0x18a   :  { %v317_v49 = vpop.f32.mrf.mxu1 }
 0x18b   :  { %v318_v58 = vadd.f32 %v528_v12, %v317_v49 }
 0x18d   :  { %v339_v62 = vmax.f32 %v318_v58, 0.0 }
 0x192   :  { %v319_v50 = vpop.f32.mrf.mxu1 }
 0x193   :  { %v320_v55 = vadd.f32 %v528_v12, %v319_v50 }
 0x195   :  { %v340_v60 = vmax.f32 %v320_v55, 0.0 }
 0x197   :  { %v350_v0 = vpack.c.bf16 %v340_v60, %v339_v62 }
 0x199   :  { %v377_v3 = vsel %vm354_vm1, %v350_v0, 0 }
 0x19a   :  { %v322_v51 = vpop.f32.mrf.mxu1 }
 0x19b   :  { %v323_v52 = vadd.f32 %v528_v12, %v322_v51 }
 0x19d   :  { %v341_v56 = vmax.f32 %v323_v52, 0.0 }
 0x1a2   :  { %v324_v53 = vpop.f32.mrf.mxu1 }
 0x1a3   :  { %v325_v54 = vadd.f32 %v528_v12, %v324_v53  ;;  %v343_v12 = vld [vmem:[%s667_s5] sm:$0x1] }
 0x1a5   :  { %v342_v57 = vmax.f32 %v325_v54, 0.0 }
 0x1a7   :  { %v351_v59 = vpack.c.bf16 %v342_v57, %v341_v56 }
 0x1a9   :  { %v380_v61 = vsel %vm354_vm1, %v351_v59, 0 }
 0x1aa   :  { %382 = vmatpush.bf16.xpose.msra.mxu2 %v380_v61 }
 0x1b2   :  { %383 = vmatpush.bf16.xpose.msra.mxu2 %v377_v3 }
 0x1ba   :  { %384 = vmatpush.bf16.xpose.msra.mxu2 %v374_v6 }
 0x1c2   :  { %385 = vmatpush.bf16.xpose.msra.mxu2 %v371_v7 }
 0x1ca   :  { %386 = vmatpush.bf16.xpose.msra.mxu2 %v368_v8 }
 0x1d2   :  { %387 = vmatpush.bf16.xpose.msra.mxu2 %v365_v9 }
 0x1da   :  { %388 = vmatpush.bf16.xpose.msra.mxu2 %v362_v10 }
 0x1e2   :  { %389 = vmatpush.bf16.xpose.msra.mxu2 %v359_v11 }
 0x1e9   :  { %499 = vmatmul.msk.bf16.vlgmr.msra.gmra.mxu2 %vm354_vm1, %v343_v12 }
 0x26c   :  { %v391_v14 = vpop.f32.mrf.mxu2 }
 0x26d   :  { %v392_v15 = vadd.f32 %v391_v14, %v353_v13 }
 0x26f   :  { %v500_v16 = vmul.f32 -1.442695, %v392_v15 }
 0x271   :  { %529 = vpow2.f32 %v500_v16 }
 0x274   :  { %v393_v17 = vpop.f32.mrf.mxu2 }
 0x277   :  { %v530_v20 = vpop.eup %529 }
 0x278   :  { %v398_v21 = vadd.f32 1.0, %v530_v20 }
 0x27a   :  { %531 = vrcp.f32 %v398_v21  ;;  %v410_v23 = vand.u32 2147483648, %v398_v21  ;;  %v408_v25 = vand.u32 2147483647, %v398_v21  ;;  %vm404_vm3 = vweird.f32 %v398_v21 }
 0x27c   :  { %v411_v27 = vor.u32 1.1754944e-38, %v410_v23  ;;  %vm409_vm5 = vcmp.eq.f32.partialorder %v408_v25, 8.507059e+37 }
 0x280   :  { %v532_v18 = vpop.eup %531 }
 0x281   :  { %v400_v19 = vmul.f32 %v532_v18, %v398_v21  ;;  %vm405_vm2 = vweird.f32 %v532_v18 }
 0x282   :  { %vm406_vm4 = vmor %vm404_vm3, %vm405_vm2 }
 0x283   :  { %v401_v22 = vsub.f32 1.0, %v400_v19 }
 0x285   :  { %v402_v24 = vmul.f32 %v532_v18, %v401_v22 }
 0x287   :  { %v403_v26 = vadd.f32 %v532_v18, %v402_v24 }
 0x289   :  { %v407_v28 = vsel %vm406_vm4, %v532_v18, %v403_v26 }
 0x28a   :  { %v412_v29 = vsel %vm409_vm5, %v411_v27, %v407_v28 }
 0x28b   :  { %414 = vst [vmem:[%s669_s7] sm:$0x1] %v412_v29 }

</bundles_post_ra>
